<compile_context>
chip_gen: v5e
topology: v5e:2x2
jax: 0.10.0
libtpu: 0.0.40
codegen_flags: <defaults>
</compile_context>

<pallas_src>
import functools

import jax
import jax.numpy as jnp
from jax.experimental import pallas as pl
from jax.experimental.pallas import tpu as pltpu


def _round_up(a, b):
    return (a + b - 1) // b * b


def _leaky_relu(h):
    # torch.nn.LeakyReLU default negative_slope = 0.01
    return jnp.where(h >= 0, h, 0.01 * h)


def _intp_kernel(n_concepts,
                 x_ref, c_ref, w1_ref, b1_ref, w2_ref, b2_ref,
                 out_ref):
    """One grid step = tb batches; rows are concept-major (R = n_concepts * tb)."""
    tb, kp = out_ref.shape
    e = x_ref.shape[1]

    x = x_ref[...]                                                # (R, E) compute dtype

    if len(w2_ref.shape) == 3:
        # Split mode (3E > MXU contraction tile): per-branch matmuls, no
        # block-diagonal zero-multiplies, no lane-misaligned slicing of h.
        # w1: (3, E, E), b1: (3, 1, E), w2: (3, E, Kp).
        zs = []
        for j in range(3):
            hj = jnp.dot(x, w1_ref[j],
                         preferred_element_type=b1_ref.dtype) + b1_ref[j]
            hj = _leaky_relu(hj)                                  # stays in compute dtype
            zs.append(jnp.dot(hj, w2_ref[j],
                              preferred_element_type=jnp.float32)
                      + b2_ref[:, j * kp:(j + 1) * kp])
        z_pos, z_neg, z_bias = zs
    else:
        # Fused mode (small 3E): ONE first-layer matmul for all three branches and
        # ONE block-diagonal second-layer matmul.  w1: (E, 3E), w2: (3E, 3Kp).
        h = jnp.dot(x, w1_ref[...],
                    preferred_element_type=b1_ref.dtype) + b1_ref[...]
        h = _leaky_relu(h)                                        # compute dtype
        z = jnp.dot(h, w2_ref[...],
                    preferred_element_type=jnp.float32) + b2_ref[...]   # (R, 3Kp) f32
        z_pos = z[:, 0 * kp:1 * kp]
        z_neg = z[:, 1 * kp:2 * kp]
        z_bias = z[:, 2 * kp:3 * kp]                              # already scaled by 1/C

    coeff_pos = jax.nn.sigmoid(z_pos)                             # (R, kp) f32
    coeff_neg = jax.nn.sigmoid(z_neg)

    cvals = c_ref[...].astype(jnp.float32)                        # (R, 1)
    per_row = cvals * coeff_pos + (1.0 - cvals) * coeff_neg + z_bias   # (R, kp) f32

    # Per-batch reduction over concepts: rows are concept-major within the tile,
    # so this is C-1 sublane-aligned slice-adds on the VPU (tb % 8 == 0).
    acc = per_row[0:tb, :]
    for j in range(1, n_concepts):
        acc = acc + per_row[j * tb:(j + 1) * tb, :]
    out_ref[...] = acc


def pack_params(p, n_concepts, compute_dtype=jnp.bfloat16, fuse_w2_max_width=256):
    """One-time constant transform of the module parameters.

    * Folds 1/n_concepts (the bias branch's mean over concepts) into w2b/b2b.
    * Pads class outputs to Kp = round_up(K, 128) lanes (lane-dense stores).
    * If 3E <= fuse_w2_max_width (256 for v6e/v7x, use 128 on v5e): fused layout
      (w1 (E,3E), block-diagonal w2 (3E,3Kp)).  Otherwise: split layout
      (w1 (3,E,E), w2 (3,E,Kp)) so the MXU never multiplies the 2/3 zero blocks.
    * compute_dtype (default bf16) applies to MXU operands and to the first-layer
      bias / LeakyReLU; second-layer bias and everything after stays f32.
    """
    E = p["w1p"].shape[0]
    K = p["w2p"].shape[1]
    Kp = _round_up(K, 128)
    inv_c = 1.0 / float(n_concepts)

    def pad_cols(w):                                   # (E, K) -> (E, Kp)
        return jnp.pad(w, ((0, 0), (0, Kp - K)))

    w2p = pad_cols(p["w2p"])
    w2n = pad_cols(p["w2n"])
    w2b = pad_cols(p["w2b"] * inv_c)

    fused = (3 * E) <= fuse_w2_max_width
    if fused:
        w1 = jnp.concatenate([p["w1p"], p["w1n"], p["w1b"]], axis=1)      # (E, 3E)
        b1 = jnp.concatenate([p["b1p"], p["b1n"], p["b1b"]], axis=1)      # (1, 3E)
        w2 = jnp.zeros((3 * E, 3 * Kp), jnp.float32)
        w2 = w2.at[0 * E:1 * E, 0 * Kp:1 * Kp].set(w2p)
        w2 = w2.at[1 * E:2 * E, 1 * Kp:2 * Kp].set(w2n)
        w2 = w2.at[2 * E:3 * E, 2 * Kp:3 * Kp].set(w2b)
    else:
        w1 = jnp.stack([p["w1p"], p["w1n"], p["w1b"]], axis=0)            # (3, E, E)
        b1 = jnp.stack([p["b1p"], p["b1n"], p["b1b"]], axis=0)            # (3, 1, E)
        w2 = jnp.stack([w2p, w2n, w2b], axis=0)                           # (3, E, Kp)

    b2 = jnp.zeros((1, 3 * Kp), jnp.float32)
    b2 = b2.at[0, 0 * Kp:0 * Kp + K].set(p["b2p"][0])
    b2 = b2.at[0, 1 * Kp:1 * Kp + K].set(p["b2n"][0])
    b2 = b2.at[0, 2 * Kp:2 * Kp + K].set(p["b2b"][0] * inv_c)

    return dict(
        w1=w1.astype(compute_dtype),
        b1=b1.astype(compute_dtype),     # bias add + leaky_relu run in compute dtype
        w2=w2.astype(compute_dtype),
        b2=b2,                           # z / sigmoid / mix / reduction stay f32
        n_classes=K,
        kp=Kp,
        emb_size=E,
    )


def intp_linear_layer2(x, c, packed, *, target_rows=4096):
    """x: (B, C, E) float, c: (B, C) float in [0, 1]. Returns (B, K) f32 logits."""
    B, C, E = x.shape
    assert E == packed["emb_size"]
    K = packed["n_classes"]
    Kp = packed["kp"]
    cdt = packed["w1"].dtype

    # ---- tile size: tb batches / grid step, tb multiple of 8 (sublane rule) ----
    tb = max(8, (max(target_rows, 8) // C) // 8 * 8)
    if B > 8:
        # keep >= 2 grid steps so the v7x megacore can shard the "parallel" axis
        tb = min(tb, _round_up(-(-B // 2), 8))
    tb = min(tb, _round_up(B, 8))
    Bp = _round_up(B, tb)
    nT = Bp // tb
    R = C * tb                           # rows per grid step

    # ---- wrapper-side relayout: concept-major rows within each batch tile ----
    xp, cp = x, c
    if Bp != B:
        xp = jnp.pad(x, ((0, Bp - B), (0, 0), (0, 0)))
        cp = jnp.pad(c, ((0, Bp - B), (0, 0)))
    x_cm = (xp.astype(cdt)
            .reshape(nT, tb, C, E)
            .transpose(0, 2, 1, 3)       # (tile, concept, batch_in_tile, E)
            .reshape(nT * R, E))
    c_cm = (cp.astype(jnp.float32)
            .reshape(nT, tb, C)
            .transpose(0, 2, 1)
            .reshape(nT * R, 1))

    w1, b1, w2, b2 = packed["w1"], packed["b1"], packed["w2"], packed["b2"]

    # ---- resident (constant index_map) operands: single-buffer them when big ----
    resident_bytes = sum(int(a.size) * a.dtype.itemsize for a in (w1, b1, w2, b2))
    const_mode = pl.Buffered(1) if resident_bytes > (4 << 20) else None

    def const_spec(a):
        nd = a.ndim
        imap = lambda i, _nd=nd: (0,) * _nd
        if const_mode is None:
            return pl.BlockSpec(a.shape, imap)
        return pl.BlockSpec(a.shape, imap, pipeline_mode=const_mode)

    # ---- VMEM limit: 25% headroom below physical (48 MiB v7x, 64 MiB v5e/v6e) ----
    try:
        vmem_cap = int(pltpu.get_tpu_info().vmem_capacity_bytes)
    except Exception:
        vmem_cap = 128 * 1024 * 1024
    vmem_limit = int(min(64 * 1024 * 1024, (vmem_cap * 3) // 4))

    kernel = functools.partial(_intp_kernel, C)
    out = pl.pallas_call(
        kernel,
        out_shape=jax.ShapeDtypeStruct((Bp, Kp), jnp.float32),
        grid_spec=pl.GridSpec(
            grid=(nT,),
            in_specs=[
                pl.BlockSpec((R, E), lambda i: (i, 0)),     # x rows (pipelined stream)
                pl.BlockSpec((R, 1), lambda i: (i, 0)),     # c rows (pipelined stream)
                const_spec(w1),                             # resident weights / biases
                const_spec(b1),
                const_spec(w2),
                const_spec(b2),
            ],
            out_specs=pl.BlockSpec((tb, Kp), lambda i: (i, 0)),   # lane-dense store
        ),
        compiler_params=pltpu.CompilerParams(
            dimension_semantics=("parallel",),              # megacore-shardable batch axis
            vmem_limit_bytes=vmem_limit),
    )(x_cm, c_cm, w1, b1, w2, b2)

    return out[:B, :K]


def init_params(key, emb_size, n_classes):
    """Synthetic params matching the module's __init__ shapes (weights as (in, out))."""
    ks = jax.random.split(key, 12)

    def lin(kw, kb, fan_in, fan_out):
        bound = 1.0 / jnp.sqrt(fan_in)
        w = jax.random.uniform(kw, (fan_in, fan_out), jnp.float32, -bound, bound)
        b = jax.random.uniform(kb, (1, fan_out), jnp.float32, -bound, bound)
        return w, b

    w1p, b1p = lin(ks[0], ks[1], emb_size, emb_size)
    w2p, b2p = lin(ks[2], ks[3], emb_size, n_classes)
    w1n, b1n = lin(ks[4], ks[5], emb_size, emb_size)
    w2n, b2n = lin(ks[6], ks[7], emb_size, n_classes)
    w1b, b1b = lin(ks[8], ks[9], emb_size, emb_size)
    w2b, b2b = lin(ks[10], ks[11], emb_size, n_classes)
    return dict(w1p=w1p, b1p=b1p, w2p=w2p, b2p=b2p,
                w1n=w1n, b1n=b1n, w2n=w2n, b2n=b2n,
                w1b=w1b, b1b=b1b, w2b=w2b, b2b=b2b)


def reference_forward(x, c, p):
    """Pure-JAX mirror of the PyTorch forward (correctness oracle, f32)."""
    def mlp(x, w1, b1, w2, b2):
        h = x @ w1 + b1[0]
        h = _leaky_relu(h)
        return h @ w2 + b2[0]

    coeff_pos = jax.nn.sigmoid(mlp(x, p["w1p"], p["b1p"], p["w2p"], p["b2p"]))
    coeff_neg = jax.nn.sigmoid(mlp(x, p["w1n"], p["b1n"], p["w2n"], p["b2n"]))
    neg_c = 1.0 - c                                   # GodelTNorm.neg
    logits = (c[..., None] * coeff_pos).sum(axis=1) + \
             (neg_c[..., None] * coeff_neg).sum(axis=1)
    bias_vals = mlp(x, p["w1b"], p["b1b"], p["w2b"], p["b2b"]).mean(axis=1)
    return logits + bias_vals


if __name__ == "__main__":
    key = jax.random.PRNGKey(0)
    k1, k2, k3 = jax.random.split(key, 3)

    def run_case(k, B, C, E, K, compute_dtype, target_rows, atol, rtol):
        kx, kc, kp = jax.random.split(k, 3)
        x = jax.random.normal(kx, (B, C, E), jnp.float32)
        c = jax.random.uniform(kc, (B, C), jnp.float32)   # concept activations in [0, 1]
        params = init_params(kp, E, K)
        packed = pack_params(params, n_concepts=C, compute_dtype=compute_dtype)
        out = jax.block_until_ready(
            intp_linear_layer2(x, c, packed, target_rows=target_rows))
        ref = reference_forward(x, c, params)
        assert out.shape == (B, K)
        err = float(jnp.max(jnp.abs(out - ref)))
        assert jnp.allclose(out, ref, atol=atol, rtol=rtol), (B, C, E, K, "max_err", err)

    # 1) f32 compute path, single grid step, fused (block-diagonal) second layer.
    run_case(k1, B=2, C=4, E=32, K=8,
             compute_dtype=jnp.float32, target_rows=4096, atol=1e-2, rtol=1e-2)

    # 2) Default bf16 path, multi-step grid (3 steps), batch padding, non-aligned
    #    E / K / C, fused second layer.
    run_case(k2, B=20, C=5, E=48, K=3,
             compute_dtype=jnp.bfloat16, target_rows=64, atol=6e-2, rtol=6e-2)

    # 3) bf16, split second layer (3E = 384 > 256) and a 2-step "parallel" grid
    #    (both v7x TensorCores active).
    run_case(k3, B=16, C=4, E=128, K=10,
             compute_dtype=jnp.bfloat16, target_rows=4096, atol=6e-2, rtol=6e-2)

    print("KERNEL_OK")
</pallas_src>

<mosaic_0001>
module attributes {stable_mosaic.version = 11 : i64} {
  func.func @_intp_kernel(%arg0: i32, %arg1: memref<32x32xf32, #tpu.memory_space<vmem>>, %arg2: memref<32x1xf32, #tpu.memory_space<vmem>>, %arg3: memref<32x96xf32, #tpu.memory_space<vmem>>, %arg4: memref<1x96xf32, #tpu.memory_space<vmem>>, %arg5: memref<96x384xf32, #tpu.memory_space<vmem>>, %arg6: memref<1x384xf32, #tpu.memory_space<vmem>>, %arg7: memref<8x128xf32, #tpu.memory_space<vmem>>) attributes {dimension_semantics = [#tpu.dimension_semantics<parallel>], iteration_bounds = array<i64: 1>, scalar_prefetch = 0 : i64, scratch_operands = 0 : i64, tpu.core_type = #tpu.core_type<tc>, window_params = [{transform_indices = @transform_0, window_bounds = array<i64: 32, 32>}, {transform_indices = @transform_1, window_bounds = array<i64: 32, 1>}, {pipeline_mode = #tpu.pipeline_mode<synchronous>, transform_indices = @transform_2, window_bounds = array<i64: 32, 96>}, {pipeline_mode = #tpu.pipeline_mode<synchronous>, transform_indices = @transform_3, window_bounds = array<i64: 1, 96>}, {pipeline_mode = #tpu.pipeline_mode<synchronous>, transform_indices = @transform_4, window_bounds = array<i64: 96, 384>}, {pipeline_mode = #tpu.pipeline_mode<synchronous>, transform_indices = @transform_5, window_bounds = array<i64: 1, 384>}, {transform_indices = @transform_6, window_bounds = array<i64: 8, 128>}]} {
    %c0 = arith.constant 0 : index
    %c0_0 = arith.constant 0 : index
    %0 = vector.load %arg1[%c0, %c0_0] : memref<32x32xf32, #tpu.memory_space<vmem>>, vector<32x32xf32>
    %c0_1 = arith.constant 0 : index
    %c0_2 = arith.constant 0 : index
    %1 = vector.load %arg3[%c0_1, %c0_2] : memref<32x96xf32, #tpu.memory_space<vmem>>, vector<32x96xf32>
    %cst = arith.constant dense<0.000000e+00> : vector<32x96xf32>
    %2 = tpu.matmul %0, %1, %cst {dimension_numbers = #tpu.dot_dimension_numbers<[1], [0], [0], [1], [0, 0, 1, 1], [], []>} : vector<32x32xf32>, vector<32x96xf32>, vector<32x96xf32> -> vector<32x96xf32>
    %c0_3 = arith.constant 0 : index
    %c0_4 = arith.constant 0 : index
    %3 = vector.load %arg4[%c0_3, %c0_4] : memref<1x96xf32, #tpu.memory_space<vmem>>, vector<1x96xf32>
    %4 = vector.broadcast %3 : vector<1x96xf32> to vector<32x96xf32>
    %5 = arith.addf %2, %4 : vector<32x96xf32>
    %cst_5 = arith.constant 0.000000e+00 : f32
    %6 = vector.broadcast %cst_5 : f32 to vector<32x96xf32>
    %7 = arith.cmpf oge, %5, %6 : vector<32x96xf32>
    %cst_6 = arith.constant 0.00999999977 : f32
    %8 = vector.broadcast %cst_6 : f32 to vector<32x96xf32>
    %9 = arith.mulf %8, %5 : vector<32x96xf32>
    %10 = arith.select %7, %5, %9 : vector<32x96xi1>, vector<32x96xf32>
    %c0_7 = arith.constant 0 : index
    %c0_8 = arith.constant 0 : index
    %11 = vector.load %arg5[%c0_7, %c0_8] : memref<96x384xf32, #tpu.memory_space<vmem>>, vector<96x384xf32>
    %cst_9 = arith.constant dense<0.000000e+00> : vector<32x384xf32>
    %12 = tpu.matmul %10, %11, %cst_9 {dimension_numbers = #tpu.dot_dimension_numbers<[1], [0], [0], [1], [0, 0, 1, 1], [], []>} : vector<32x96xf32>, vector<96x384xf32>, vector<32x384xf32> -> vector<32x384xf32>
    %c0_10 = arith.constant 0 : index
    %c0_11 = arith.constant 0 : index
    %13 = vector.load %arg6[%c0_10, %c0_11] : memref<1x384xf32, #tpu.memory_space<vmem>>, vector<1x384xf32>
    %14 = vector.broadcast %13 : vector<1x384xf32> to vector<32x384xf32>
    %15 = arith.addf %12, %14 : vector<32x384xf32>
    %16 = vector.extract_strided_slice %15 {offsets = [0, 0], sizes = [32, 128], strides = [1, 1]} : vector<32x384xf32> to vector<32x128xf32>
    %17 = vector.extract_strided_slice %15 {offsets = [0, 128], sizes = [32, 128], strides = [1, 1]} : vector<32x384xf32> to vector<32x128xf32>
    %18 = vector.extract_strided_slice %15 {offsets = [0, 256], sizes = [32, 128], strides = [1, 1]} : vector<32x384xf32> to vector<32x128xf32>
    %19 = arith.negf %16 : vector<32x128xf32>
    %20 = math.exp %19 : vector<32x128xf32>
    %cst_12 = arith.constant 1.000000e+00 : f32
    %21 = vector.broadcast %cst_12 : f32 to vector<32x128xf32>
    %22 = arith.addf %21, %20 : vector<32x128xf32>
    %23 = arith.divf %21, %22 : vector<32x128xf32>
    %24 = arith.negf %17 : vector<32x128xf32>
    %25 = math.exp %24 : vector<32x128xf32>
    %cst_13 = arith.constant 1.000000e+00 : f32
    %26 = vector.broadcast %cst_13 : f32 to vector<32x128xf32>
    %27 = arith.addf %26, %25 : vector<32x128xf32>
    %28 = arith.divf %26, %27 : vector<32x128xf32>
    %c0_14 = arith.constant 0 : index
    %c0_15 = arith.constant 0 : index
    %29 = vector.load %arg2[%c0_14, %c0_15] : memref<32x1xf32, #tpu.memory_space<vmem>>, vector<32x1xf32>
    %30 = vector.broadcast %29 : vector<32x1xf32> to vector<32x128xf32>
    %31 = arith.mulf %30, %23 : vector<32x128xf32>
    %cst_16 = arith.constant 1.000000e+00 : f32
    %32 = vector.broadcast %cst_16 : f32 to vector<32x1xf32>
    %33 = arith.subf %32, %29 : vector<32x1xf32>
    %34 = vector.broadcast %33 : vector<32x1xf32> to vector<32x128xf32>
    %35 = arith.mulf %34, %28 : vector<32x128xf32>
    %36 = arith.addf %31, %35 : vector<32x128xf32>
    %37 = arith.addf %36, %18 : vector<32x128xf32>
    %38 = vector.extract_strided_slice %37 {offsets = [0, 0], sizes = [8, 128], strides = [1, 1]} : vector<32x128xf32> to vector<8x128xf32>
    %39 = vector.extract_strided_slice %37 {offsets = [8, 0], sizes = [8, 128], strides = [1, 1]} : vector<32x128xf32> to vector<8x128xf32>
    %40 = arith.addf %38, %39 : vector<8x128xf32>
    %41 = vector.extract_strided_slice %37 {offsets = [16, 0], sizes = [8, 128], strides = [1, 1]} : vector<32x128xf32> to vector<8x128xf32>
    %42 = arith.addf %40, %41 : vector<8x128xf32>
    %43 = vector.extract_strided_slice %37 {offsets = [24, 0], sizes = [8, 128], strides = [1, 1]} : vector<32x128xf32> to vector<8x128xf32>
    %44 = arith.addf %42, %43 : vector<8x128xf32>
    %c0_17 = arith.constant 0 : index
    %c0_18 = arith.constant 0 : index
    %45 = vector.load %arg7[%c0_17, %c0_18] : memref<8x128xf32, #tpu.memory_space<vmem>>, vector<8x128xf32>
    tpu.vector_store %arg7[%c0_17, %c0_18], %44 {strides = array<i32>} : memref<8x128xf32, #tpu.memory_space<vmem>>, vector<8x128xf32>,
    return
  }
  func.func @transform_0(%arg0: i32) -> (i32, i32) {
    %c0_i32 = arith.constant 0 : i32
    %c0_i32_0 = arith.constant 0 : i32
    return %arg0, %c0_i32 : i32, i32
  }
  func.func @transform_1(%arg0: i32) -> (i32, i32) {
    %c0_i32 = arith.constant 0 : i32
    %c0_i32_0 = arith.constant 0 : i32
    return %arg0, %c0_i32 : i32, i32
  }
  func.func @transform_2(%arg0: i32) -> (i32, i32) {
    %c0_i32 = arith.constant 0 : i32
    %c0_i32_0 = arith.constant 0 : i32
    %c0_i32_1 = arith.constant 0 : i32
    return %c0_i32, %c0_i32_0 : i32, i32
  }
  func.func @transform_3(%arg0: i32) -> (i32, i32) {
    %c0_i32 = arith.constant 0 : i32
    %c0_i32_0 = arith.constant 0 : i32
    %c0_i32_1 = arith.constant 0 : i32
    return %c0_i32, %c0_i32_0 : i32, i32
  }
  func.func @transform_4(%arg0: i32) -> (i32, i32) {
    %c0_i32 = arith.constant 0 : i32
    %c0_i32_0 = arith.constant 0 : i32
    %c0_i32_1 = arith.constant 0 : i32
    return %c0_i32, %c0_i32_0 : i32, i32
  }
  func.func @transform_5(%arg0: i32) -> (i32, i32) {
    %c0_i32 = arith.constant 0 : i32
    %c0_i32_0 = arith.constant 0 : i32
    %c0_i32_1 = arith.constant 0 : i32
    return %c0_i32, %c0_i32_0 : i32, i32
  }
  func.func @transform_6(%arg0: i32) -> (i32, i32) {
    %c0_i32 = arith.constant 0 : i32
    %c0_i32_0 = arith.constant 0 : i32
    return %arg0, %c0_i32 : i32, i32
  }
}

</mosaic_0001>

<bundles_post_ra>
// kernel: tpu_custom_call.1
= control target key start
LH: loop header
LB: loop body
LE: loop exit
PB: predicated region body
PF: predicated region fallthrough
CT: control target
= control target key end

     0   :  { %11 = vsyncpa [#allocation3], 0  ;;  %s967_s0 = inlined_call_operand.vmem [shape: f32[32,32], index: 0, kind: input, shape index: {}]   ;;  %s968_s1 = inlined_call_operand.vmem [shape: f32[32,1], index: 1, kind: input, shape index: {}]   ;;  %s969_s2 = inlined_call_operand.hbm [shape: f32[32,96], index: 2, kind: input, shape index: {}]   ;;  %s970_s3 = inlined_call_operand.hbm [shape: f32[1,96], index: 3, kind: input, shape index: {}]   ;;  %s971_s4 = inlined_call_operand.hbm [shape: f32[96,384], index: 4, kind: input, shape index: {}]   ;;  %s972_s5 = inlined_call_operand.vmem [shape: f32[1,384], index: 5, kind: input, shape index: {}]   ;;  %s973_s6 = inlined_call_operand.hbm [shape: f32[8,128], index: 6, kind: output, shape index: {}]  }
   0x1   :  { %12 = vsyncpa [#allocation6], 0  ;;  %s36_s23 = sshll.u32 %s970_s3, 4  ;;  %s37_s23 = int_to_ptr.hbm [resolvable:$true] %s36_s23 }
   0x2   :  { %13 = vsyncpa [#allocation4], 0  ;;  %s688_s24 = smov [#allocation5]   ;;  %s22_s28 = sshll.u32 %s969_s2, 4  ;;  %s23_s28 = int_to_ptr.hbm [resolvable:$true] %s22_s28 }
   0x3   :  { %s38_s25 = sshll.u32 %s688_s24, 4  ;;  %s689_s29 = smov [#allocation2]   ;;  %s39_s25 = int_to_ptr.vmem [resolvable:$true] %s38_s25 }
   0x4   :  { %41 = dma.hbm_to_vmem [thread:$0]  %s37_s23, 16, %s39_s25, [#allocation6]  }
   0x5   :  { %s24_s30 = sshll.u32 %s689_s29, 4  ;;  %s690_s7 = smov 128   ;;  %s25_s30 = int_to_ptr.vmem [resolvable:$true] %s24_s30 }
   0x6   :  { %s691_s8 = smov 8   ;;  %s46_s3 = sshll.u32 %s971_s4, 4  ;;  %s47_s3 = int_to_ptr.hbm [resolvable:$true] %s46_s3 }
   0x7   :  { %30 = dma.hbm_to_vmem [thread:$0]  %s23_s28, 512, %s25_s30, [#allocation3], %s690_s7, %s690_s7, %s691_s8  }
   0x8   :  { %s692_s11 = smov [#allocation7]   ;;  %s693_s13 = smov 384  }
   0x9   :  { %s48_s12 = sshll.u32 %s692_s11, 4  ;;  %s694_s14 = smov 24   ;;  %s49_s12 = int_to_ptr.vmem [resolvable:$true] %s48_s12 }
   0xa   :  { %54 = dma.hbm_to_vmem [thread:$0]  %s47_s3, 4608, %s49_s12, [#allocation6], %s693_s13, %s693_s13, %s694_s14  }
   0xb   :  { %682 = dma.done.wait [#allocation3], 512  }
   0xc   :  { %683 = vsyncadd [#allocation3], 4294966784 }
   0xd   :  { %684 = dma.done.wait [#allocation6], 4624  }
   0xe   :  { %685 = vsyncadd [#allocation6], 4294962672  ;;  %v76_v0 = vld [vmem:[#allocation2 + $0x18] sm:$0xff]  ;;  %v75_v1 = vld [vmem:[#allocation2 + $0x10] sm:$0xff]  ;;  %vm81_vm0 = vcmask 261120   ;;  %v695_v47 = vmov 0  }
   0xf   :  { %106 = vmatpush.msra.mxu0 %v76_v0  ;;  %v74_v2 = vld [vmem:[#allocation2 + $0x8] sm:$0xff]  ;;  %v73_v3 = vld [vmem:[#allocation2] sm:$0xff]  ;;  %v169_v5 = vld [vmem:[#allocation7 + $0x110] sm:$0xff]  ;;  %552 = vset.pattern.permute.xlu1 %v695_v47  ;;  %vm179_vm2 = vcmask 785408   ;;  %s506_s8 = sshll.u32 %s973_s6, 4  ;;  %s507_s8 = int_to_ptr.hbm [resolvable:$true] %s506_s8 }
  0x10   :  { %v168_v4 = vld [vmem:[#allocation7 + $0x108] sm:$0xff]  ;;  %v170_v6 = vld [vmem:[#allocation7 + $0x118] sm:$0xff]  ;;  %v165_v7 = vld [vmem:[#allocation7 + $0xf0] sm:$0xff]  ;;  %225 = vmatpush.msra.mxu2 %v169_v5  ;;  %550 = vset.pattern.permute.xlu0 %v695_v47 }
  0x11   :  { %107 = vmatpush.msra.mxu0 %v75_v1  ;;  %196 = vmatpush.msra.mxu1 %v168_v4  ;;  %v166_v8 = vld [vmem:[#allocation7 + $0xf8] sm:$0xff]  ;;  %v167_v9 = vld [vmem:[#allocation7 + $0x100] sm:$0xff]  ;;  %v164_v13 = vld [vmem:[#allocation7 + $0xe8] sm:$0xff] }
  0x12   :  { %254 = vmatpush.msra.mxu3 %v170_v6  ;;  %v162_v10 = vld [vmem:[#allocation7 + $0xd8] sm:$0xff]  ;;  %v163_v12 = vld [vmem:[#allocation7 + $0xe0] sm:$0xff]  ;;  %226 = vmatpush.msra.mxu2 %v166_v8  ;;  %v160_v15 = vld [vmem:[#allocation7 + $0xc8] sm:$0xff] }
  0x13   :  { %108 = vmatpush.msra.mxu0 %v74_v2  ;;  %v69_v11 = vld [vmem:[%s967_s0] sm:$0xff]  ;;  %197 = vmatpush.msra.mxu1 %v165_v7  ;;  %v161_v16 = vld [vmem:[#allocation7 + $0xd0] sm:$0xff]  ;;  %v156_v17 = vld [vmem:[#allocation7 + $0xa8] sm:$0xff] }
  0x14   :  { %255 = vmatpush.msra.mxu3 %v167_v9  ;;  %v159_v14 = vld [vmem:[#allocation7 + $0xc0] sm:$0xff]  ;;  %227 = vmatpush.msra.mxu2 %v163_v12  ;;  %v157_v18 = vld [vmem:[#allocation7 + $0xb0] sm:$0xff]  ;;  %v158_v19 = vld [vmem:[#allocation7 + $0xb8] sm:$0xff] }
  0x15   :  { %109 = vmatpush.msra.mxu0 %v73_v3  ;;  %198 = vmatpush.msra.mxu1 %v162_v10  ;;  %v153_v20 = vld [vmem:[#allocation7 + $0x90] sm:$0xff]  ;;  %v154_v21 = vld [vmem:[#allocation7 + $0x98] sm:$0xff]  ;;  %v155_v22 = vld [vmem:[#allocation7 + $0xa0] sm:$0xff] }
  0x16   :  { %517 = vmatmul.msk.f32.vlgmr.msra.gmra.mxu0 %vm81_vm0, %v69_v11  ;;  %256 = vmatpush.msra.mxu3 %v164_v13  ;;  %v150_v23 = vld [vmem:[#allocation7 + $0x78] sm:$0xff]  ;;  %v70_v24 = vld [vmem:[%s967_s0 + $0x8] sm:$0xff]  ;;  %v149_v29 = vld [vmem:[#allocation7 + $0x70] sm:$0xff] }
  0x17   :  { %199 = vmatpush.msra.mxu1 %v159_v14  ;;  %228 = vmatpush.msra.mxu2 %v160_v15  ;;  %v151_v25 = vld [vmem:[#allocation7 + $0x80] sm:$0xff]  ;;  %v152_v26 = vld [vmem:[#allocation7 + $0x88] sm:$0xff]  ;;  %v145_v31 = vld [vmem:[#allocation7 + $0x50] sm:$0xff] }
  0x18   :  { %257 = vmatpush.msra.mxu3 %v161_v16  ;;  %v147_v27 = vld [vmem:[#allocation7 + $0x60] sm:$0xff]  ;;  %v148_v28 = vld [vmem:[#allocation7 + $0x68] sm:$0xff]  ;;  %v146_v32 = vld [vmem:[#allocation7 + $0x58] sm:$0xff]  ;;  %551 = vset.pattern.permute.xlu2 %v695_v47 }
  0x19   :  { %200 = vmatpush.msra.mxu1 %v156_v17  ;;  %229 = vmatpush.msra.mxu2 %v157_v18  ;;  %v144_v30 = vld [vmem:[#allocation7 + $0x48] sm:$0xff]  ;;  %v72_v34 = vld [vmem:[%s967_s0 + $0x18] sm:$0xff]  ;;  %v143_v37 = vld [vmem:[#allocation7 + $0x40] sm:$0xff] }
  0x1a   :  { %258 = vmatpush.msra.mxu3 %v158_v19  ;;  %v71_v33 = vld [vmem:[%s967_s0 + $0x10] sm:$0xff]  ;;  %v142_v36 = vld [vmem:[#allocation7 + $0x38] sm:$0xff]  ;;  %v139_v39 = vld [vmem:[#allocation7 + $0x20] sm:$0xff] }
  0x1b   :  { %201 = vmatpush.msra.mxu1 %v153_v20  ;;  %230 = vmatpush.msra.mxu2 %v154_v21  ;;  %v141_v35 = vld [vmem:[#allocation7 + $0x30] sm:$0xff]  ;;  %v138_v38 = vld [vmem:[#allocation7 + $0x18] sm:$0xff]  ;;  %v140_v40 = vld [vmem:[#allocation7 + $0x28] sm:$0xff] }
  0x1c   :  { %259 = vmatpush.msra.mxu3 %v155_v22  ;;  %v135_v41 = vld [vmem:[#allocation7] sm:$0xff]  ;;  %v136_v42 = vld [vmem:[#allocation7 + $0x8] sm:$0xff]  ;;  %v137_v43 = vld [vmem:[#allocation7 + $0x10] sm:$0xff] }
  0x1d   :  { %202 = vmatpush.msra.mxu1 %v150_v23  ;;  %231 = vmatpush.msra.mxu2 %v151_v25  ;;  %v553_v44 = vld [vmem:[#allocation5] ss:$0 sm:$0xff]  ;;  %v433_v49 = vld [vmem:[%s968_s1 + $0x10] sm:$0xff]  ;;  %v432_v52 = vld [vmem:[%s968_s1 + $0x8] sm:$0xff] }
  0x1e   :  { %518 = vmatmul.msk.f32.gmra.mxu0 %vm81_vm0, %v70_v24  ;;  %260 = vmatpush.msra.mxu3 %v152_v26  ;;  %v431_v45 = vld [vmem:[%s968_s1] sm:$0xff]  ;;  %v460_v54 = vsub.f32 1.0, %v432_v52  ;;  %v461_v55 = vsub.f32 1.0, %v433_v49  ;;  %v434_v59 = vld [vmem:[%s968_s1 + $0x18] sm:$0xff] }
  0x1f   :  { %203 = vmatpush.msra.mxu1 %v147_v27  ;;  %232 = vmatpush.msra.mxu2 %v148_v28  ;;  %v459_v48 = vsub.f32 1.0, %v431_v45  ;;  %v462_v61 = vsub.f32 1.0, %v434_v59  ;;  %v171_v6 = vld [vmem:[%s972_s5] sm:$0x7]  ;;  %s696_s5 = smov [#allocation8]  }
  0x20   :  { %261 = vmatpush.msra.mxu3 %v149_v29  ;;  %437 = vperm.xlu0 %550, %v431_v45   ;;  %v173_v7 = vperm.slane %v171_v6, 0  ;;  %v174_v11 = vperm.slane %v171_v6, 1  ;;  %s504_s29 = sshll.u32 %s696_s5, 4  ;;  %s505_s29 = int_to_ptr.vmem [resolvable:$true] %s504_s29 }
  0x21   :  { %204 = vmatpush.msra.mxu1 %v144_v30  ;;  %233 = vmatpush.msra.mxu2 %v145_v31 }
  0x22   :  { %262 = vmatpush.msra.mxu3 %v146_v32  ;;  %465 = vperm.xlu1 %552, %v459_v48  }
  0x23   :  { %205 = vmatpush.msra.mxu1 %v141_v35  ;;  %234 = vmatpush.msra.mxu2 %v142_v36 }
  0x24   :  { %263 = vmatpush.msra.mxu3 %v143_v37  ;;  %447 = vperm.xlu2 %551, %v433_v49  }
  0x25   :  { %206 = vmatpush.msra.mxu1 %v138_v38  ;;  %235 = vmatpush.msra.mxu2 %v139_v39 }
  0x26   :  { %519 = vmatmul.msk.f32.gmra.mxu0 %vm81_vm0, %v71_v33  ;;  %264 = vmatpush.msra.mxu3 %v140_v40 }
  0x27   :  { %207 = vmatpush.msra.mxu1 %v135_v41  ;;  %236 = vmatpush.msra.mxu2 %v136_v42 }
  0x28   :  { %265 = vmatpush.msra.mxu3 %v137_v43  ;;  %442 = vperm.xlu0 %550, %v432_v52  }
  0x2a   :  { %470 = vperm.xlu1 %552, %v460_v54  }
  0x2c   :  { %475 = vperm.xlu2 %551, %v461_v55   ;;  %v816_v55 = vperm.slane %v171_v6, 2 }
  0x2e   :  { %520 = vmatmul.msk.f32.gmra.mxu0 %vm81_vm0, %v72_v34 }
  0x30   :  { %452 = vperm.xlu0 %550, %v434_v59  }
  0x32   :  { %480 = vperm.xlu1 %552, %v462_v61  }
  0x93   :  { %v111_v46 = vpop.f32.mrf.mxu0 }
  0x94   :  { %v112_v50 = vadd.f32 %v553_v44, %v111_v46 }
  0x96   :  { %v127_v51 = vmul.f32 0.01, %v112_v50  ;;  %vm123_vm1 = vcmp.ge.f32.partialorder %v112_v50, 0.0 }
  0x98   :  { %v131_v53 = vsel %vm123_vm1, %v112_v50, %v127_v51 }
  0x99   :  { %521 = vmatmul.msk.f32.vlgmr.msra.gmra.mxu1 %vm179_vm2, %v131_v53  ;;  %525 = vmatmul.msk.f32.vlgmr.msra.gmra.mxu2 %vm179_vm2, %v131_v53 }
  0x9a   :  { %529 = vmatmul.msk.f32.vlgmr.msra.gmra.mxu3 %vm179_vm2, %v131_v53 }
  0x9b   :  { %v114_v56 = vpop.f32.mrf.mxu0 }
  0x9c   :  { %v115_v57 = vadd.f32 %v553_v44, %v114_v56 }
  0x9e   :  { %v128_v58 = vmul.f32 0.01, %v115_v57  ;;  %vm124_vm3 = vcmp.ge.f32.partialorder %v115_v57, 0.0 }
  0xa0   :  { %v132_v60 = vsel %vm124_vm3, %v115_v57, %v128_v58 }
  0xa1   :  { %522 = vmatmul.msk.f32.gmra.mxu1 %vm179_vm2, %v132_v60  ;;  %526 = vmatmul.msk.f32.gmra.mxu2 %vm179_vm2, %v132_v60 }
  0xa2   :  { %530 = vmatmul.msk.f32.gmra.mxu3 %vm179_vm2, %v132_v60 }
  0xa3   :  { %v117_v62 = vpop.f32.mrf.mxu0 }
  0xa4   :  { %v118_v63 = vadd.f32 %v553_v44, %v117_v62 }
  0xa6   :  { %v129_v0 = vmul.f32 0.01, %v118_v63  ;;  %vm125_vm4 = vcmp.ge.f32.partialorder %v118_v63, 0.0 }
  0xa8   :  { %v133_v1 = vsel %vm125_vm4, %v118_v63, %v129_v0 }
  0xa9   :  { %523 = vmatmul.msk.f32.gmra.mxu1 %vm179_vm2, %v133_v1  ;;  %527 = vmatmul.msk.f32.gmra.mxu2 %vm179_vm2, %v133_v1 }
  0xaa   :  { %531 = vmatmul.msk.f32.gmra.mxu3 %vm179_vm2, %v133_v1 }
  0xab   :  { %v120_v2 = vpop.f32.mrf.mxu0 }
  0xac   :  { %v121_v3 = vadd.f32 %v553_v44, %v120_v2 }
  0xae   :  { %v130_v4 = vmul.f32 0.01, %v121_v3  ;;  %vm126_vm5 = vcmp.ge.f32.partialorder %v121_v3, 0.0 }
  0xb0   :  { %v134_v5 = vsel %vm126_vm5, %v121_v3, %v130_v4 }
  0xb1   :  { %524 = vmatmul.msk.f32.gmra.mxu1 %vm179_vm2, %v134_v5  ;;  %528 = vmatmul.msk.f32.gmra.mxu2 %vm179_vm2, %v134_v5 }
  0xb2   :  { %532 = vmatmul.msk.f32.gmra.mxu3 %vm179_vm2, %v134_v5 }
 0x116   :  { %v209_v8 = vpop.f32.mrf.mxu1 }
 0x117   :  { %v210_v9 = vadd.f32 %v209_v8, %v173_v7 }
 0x119   :  { %v533_v10 = vmul.f32 -1.442695, %v210_v9 }
 0x11b   :  { %554 = vpow2.f32 %v533_v10 }
 0x11c   :  { %v238_v12 = vpop.f32.mrf.mxu2 }
 0x11d   :  { %v239_v13 = vadd.f32 %v238_v12, %v174_v11  ;;  %v811_v49 = vpop.f32.mrf.mxu3  ;;  %v438_v12 = vpop.permute.xlu0 %437 }
 0x11e   :  { %v212_v14 = vpop.f32.mrf.mxu1 }
 0x11f   :  { %v537_v15 = vmul.f32 -1.442695, %v239_v13  ;;  %v213_v16 = vadd.f32 %v212_v14, %v173_v7 }
 0x121   :  { %v555_v17 = vpop.eup %554  ;;  %556 = vpow2.f32 %v537_v15  ;;  %v534_v18 = vmul.f32 -1.442695, %v213_v16  ;;  %v466_v16 = vpop.permute.xlu1 %465 }
 0x122   :  { %v784_v19 = vadd.f32 1.0, %v555_v17 }
 0x123   :  { %558 = vpow2.f32 %v534_v18 }
 0x124   :  { %560 = vrcp.f32 %v784_v19  ;;  %v241_v20 = vpop.f32.mrf.mxu2  ;;  %v304_v50 = vand.u32 2147483647, %v784_v19  ;;  %v306_v51 = vand.u32 2147483648, %v784_v19  ;;  %vm300_vm6 = vweird.f32 %v784_v19 }
 0x125   :  { %v242_v21 = vadd.f32 %v241_v20, %v174_v11  ;;  %v866_v20 = vpop.f32.mrf.mxu3 }
 0x126   :  { %v215_v22 = vpop.f32.mrf.mxu1  ;;  %vm826_vm8 = vcmp.eq.f32.partialorder %v304_v50, 8.507059e+37  ;;  %v307_v63 = vor.u32 1.1754944e-38, %v306_v51 }
 0x127   :  { %v557_v23 = vpop.eup %556  ;;  %v538_v24 = vmul.f32 -1.442695, %v242_v21  ;;  %v216_v25 = vadd.f32 %v215_v22, %v173_v7 }
 0x128   :  { %v787_v26 = vadd.f32 1.0, %v557_v23 }
 0x129   :  { %v559_v27 = vpop.eup %558  ;;  %562 = vpow2.f32 %v538_v24  ;;  %v535_v28 = vmul.f32 -1.442695, %v216_v25 }
 0x12a   :  { %v789_v29 = vpop.eup %560  ;;  %564 = vrcp.f32 %v787_v26  ;;  %v792_v30 = vadd.f32 1.0, %v559_v27  ;;  %v380_v0 = vand.u32 2147483647, %v787_v26  ;;  %vm376_vm9 = vweird.f32 %v787_v26 }
 0x12b   :  { %566 = vpow2.f32 %v535_v28  ;;  %v296_v31 = vmul.f32 %v789_v29, %v784_v19  ;;  %vm301_vm7 = vweird.f32 %v789_v29 }
 0x12c   :  { %568 = vrcp.f32 %v792_v30  ;;  %v244_v32 = vpop.f32.mrf.mxu2  ;;  %vm844_vm10 = vmor %vm300_vm6, %vm301_vm7  ;;  %vm857_vm12 = vcmp.eq.f32.partialorder %v380_v0, 8.507059e+37  ;;  %v319_v14 = vand.u32 2147483647, %v792_v30  ;;  %v321_v15 = vand.u32 2147483648, %v792_v30 }
 0x12d   :  { %v245_v33 = vadd.f32 %v244_v32, %v174_v11  ;;  %v297_v38 = vsub.f32 1.0, %v296_v31  ;;  %vm315_vm15 = vweird.f32 %v792_v30 }
 0x12e   :  { %v218_v34 = vpop.f32.mrf.mxu1  ;;  %vm894_vm2 = vcmp.eq.f32.partialorder %v319_v14, 8.507059e+37 }
 0x12f   :  { %v563_v35 = vpop.eup %562  ;;  %v539_v36 = vmul.f32 -1.442695, %v245_v33  ;;  %v219_v37 = vadd.f32 %v218_v34, %v173_v7  ;;  %v298_v46 = vmul.f32 %v789_v29, %v297_v38  ;;  %v382_v7 = vand.u32 2147483648, %v787_v26  ;;  %v448_v38 = vpop.permute.xlu2 %447 }
 0x130   :  { %v797_v39 = vpop.eup %564  ;;  %v799_v40 = vadd.f32 1.0, %v563_v35 }
 0x131   :  { %v567_v41 = vpop.eup %566  ;;  %570 = vpow2.f32 %v539_v36  ;;  %v536_v42 = vmul.f32 -1.442695, %v219_v37  ;;  %v372_v43 = vmul.f32 %v797_v39, %v787_v26  ;;  %v299_v57 = vadd.f32 %v789_v29, %v298_v46 }
 0x132   :  { %v803_v44 = vpop.eup %568  ;;  %572 = vrcp.f32 %v799_v40  ;;  %v806_v45 = vadd.f32 1.0, %v567_v41  ;;  %vm377_vm11 = vweird.f32 %v797_v39  ;;  %v383_v23 = vor.u32 1.1754944e-38, %v382_v7 }
 0x133   :  { %574 = vpow2.f32 %v536_v42  ;;  %v373_v47 = vsub.f32 1.0, %v372_v43  ;;  %v311_v48 = vmul.f32 %v803_v44, %v792_v30  ;;  %v303_v8 = vsel %vm844_vm10, %v789_v29, %v299_v57  ;;  %vm874_vm14 = vmor %vm376_vm9, %vm377_vm11 }
 0x134   :  { %576 = vrcp.f32 %v806_v45  ;;  %v247_v52 = vpop.f32.mrf.mxu2  ;;  %vm316_vm13 = vweird.f32 %v803_v44  ;;  %v308_v21 = vsel %vm826_vm8, %v307_v63, %v303_v8  ;;  %v397_v28 = vand.u32 2147483648, %v799_v40  ;;  %v471_v63 = vpop.permute.xlu1 %470 }
 0x135   :  { %v248_v53 = vadd.f32 %v247_v52, %v174_v11  ;;  %v312_v54 = vsub.f32 1.0, %v311_v48  ;;  %v374_v58 = vmul.f32 %v797_v39, %v373_v47  ;;  %vm890_vm1 = vmor %vm315_vm15, %vm316_vm13  ;;  %vm391_vm3 = vweird.f32 %v799_v40 }
 0x136   :  { %v395_v33 = vand.u32 2147483647, %v799_v40  ;;  %v900_v34 = vmul.f32 %v438_v12, %v308_v21  ;;  %v322_v36 = vor.u32 1.1754944e-38, %v321_v15  ;;  %v334_v43 = vand.u32 2147483647, %v806_v45 }
 0x137   :  { %v571_v56 = vpop.eup %570  ;;  %v540_v59 = vmul.f32 -1.442695, %v248_v53  ;;  %v313_v2 = vmul.f32 %v803_v44, %v312_v54  ;;  %v375_v9 = vadd.f32 %v797_v39, %v374_v58  ;;  %v336_v50 = vand.u32 2147483648, %v806_v45 }
 0x138   :  { %v822_v60 = vpop.eup %572  ;;  %v824_v61 = vadd.f32 1.0, %v571_v56  ;;  %vm396_vm6 = vcmp.eq.f32.partialorder %v395_v33, 8.507059e+37  ;;  %vm330_vm7 = vweird.f32 %v806_v45  ;;  %v443_v56 = vpop.permute.xlu0 %442  ;;  %vm335_vm10 = vcmp.eq.f32.partialorder %v334_v43, 8.507059e+37 }
 0x139   :  { %v575_v1 = vpop.eup %574  ;;  %578 = vpow2.f32 %v540_v59  ;;  %v387_v3 = vmul.f32 %v822_v60, %v799_v40  ;;  %v314_v17 = vadd.f32 %v803_v44, %v313_v2  ;;  %vm392_vm0 = vweird.f32 %v822_v60  ;;  %v273_v2 = vpop.f32.mrf.mxu3 }
 0x13a   :  { %v835_v4 = vpop.eup %576  ;;  %580 = vrcp.f32 %v824_v61  ;;  %v838_v5 = vadd.f32 1.0, %v575_v1  ;;  %v379_v25 = vsel %vm874_vm14, %v797_v39, %v375_v9  ;;  %vm907_vm4 = vmor %vm391_vm3, %vm392_vm0  ;;  %v410_v59 = vand.u32 2147483647, %v824_v61 }
 0x13b   :  { %v388_v10 = vsub.f32 1.0, %v387_v3  ;;  %v326_v11 = vmul.f32 %v835_v4, %v806_v45  ;;  %v318_v35 = vsel %vm890_vm1, %v803_v44, %v314_v17  ;;  %v384_v40 = vsel %vm857_vm12, %v383_v23, %v379_v25 }
 0x13c   :  { %582 = vrcp.f32 %v838_v5  ;;  %v398_v44 = vor.u32 1.1754944e-38, %v397_v28  ;;  %vm331_vm5 = vweird.f32 %v835_v4  ;;  %v323_v48 = vsel %vm894_vm2, %v322_v36, %v318_v35 }
 0x13d   :  { %v389_v18 = vmul.f32 %v822_v60, %v388_v10  ;;  %v327_v19 = vsub.f32 1.0, %v326_v11  ;;  %v483_v52 = vmul.f32 %v466_v16, %v384_v40  ;;  %vm929_vm8 = vmor %vm330_vm7, %vm331_vm5  ;;  %v456_v62 = vmul.f32 %v443_v56, %v323_v48 }
 0x13e   :  { %v337_v6 = vor.u32 1.1754944e-38, %v336_v50  ;;  %vm406_vm11 = vweird.f32 %v824_v61  ;;  %v351_v11 = vand.u32 2147483648, %v838_v5  ;;  %vm411_vm14 = vcmp.eq.f32.partialorder %v410_v59, 8.507059e+37 }
 0x13f   :  { %v579_v24 = vpop.eup %578  ;;  %v390_v27 = vadd.f32 %v822_v60, %v389_v18  ;;  %v328_v26 = vmul.f32 %v835_v4, %v327_v19  ;;  %vm345_vm15 = vweird.f32 %v838_v5  ;;  %v349_v13 = vand.u32 2147483647, %v838_v5 }
 0x140   :  { %v581_v29 = vpop.eup %580  ;;  %v886_v31 = vadd.f32 1.0, %v579_v24  ;;  %v487_v25 = vadd.f32 %v483_v52, %v900_v34  ;;  %v274_v33 = vadd.f32 %v273_v2, %v816_v55  ;;  %v453_v36 = vpop.permute.xlu0 %452 }
 0x141   :  { %v402_v39 = vmul.f32 %v581_v29, %v824_v61  ;;  %v394_v42 = vsel %vm907_vm4, %v822_v60, %v390_v27  ;;  %v329_v46 = vadd.f32 %v835_v4, %v328_v26  ;;  %vm407_vm9 = vweird.f32 %v581_v29  ;;  %v481_v34 = vpop.permute.xlu1 %480 }
 0x142   :  { %v912_v41 = vpop.eup %582  ;;  %584 = vrcp.f32 %v886_v31  ;;  %v399_v53 = vsel %vm396_vm6, %v398_v44, %v394_v42  ;;  %v412_v60 = vand.u32 2147483648, %v824_v61  ;;  %vm408_vm13 = vmor %vm406_vm11, %vm407_vm9  ;;  %v476_v61 = vpop.permute.xlu2 %475  ;;  %v425_v18 = vand.u32 2147483647, %v886_v31 }
 0x143   :  { %v341_v47 = vmul.f32 %v912_v41, %v838_v5  ;;  %v403_v51 = vsub.f32 1.0, %v402_v39  ;;  %v333_v0 = vsel %vm929_vm8, %v835_v4, %v329_v46  ;;  %v484_v3 = vmul.f32 %v471_v63, %v399_v53 }
 0x144   :  { %vm346_vm12 = vweird.f32 %v912_v41  ;;  %v413_v10 = vor.u32 1.1754944e-38, %v412_v60  ;;  %v338_v4 = vsel %vm335_vm10, %v337_v6, %v333_v0  ;;  %v427_v19 = vand.u32 2147483648, %v886_v31 }
 0x145   :  { %v342_v54 = vsub.f32 1.0, %v341_v47  ;;  %v404_v58 = vmul.f32 %v581_v29, %v403_v51  ;;  %v488_v16 = vadd.f32 %v484_v3, %v456_v62  ;;  %vm947_vm0 = vmor %vm345_vm15, %vm346_vm12  ;;  %v457_v22 = vmul.f32 %v448_v38, %v338_v4 }
 0x146   :  { %v271_v5 = vadd.f32 %v866_v20, %v816_v55  ;;  %v352_v27 = vor.u32 1.1754944e-38, %v351_v11  ;;  %vm350_vm2 = vcmp.eq.f32.partialorder %v349_v13, 8.507059e+37  ;;  %vm421_vm3 = vweird.f32 %v886_v31  ;;  %v276_v20 = vpop.f32.mrf.mxu3 }
 0x147   :  { %v343_v45 = vmul.f32 %v912_v41, %v342_v54  ;;  %v405_v7 = vadd.f32 %v581_v29, %v404_v58  ;;  %v428_v32 = vor.u32 1.1754944e-38, %v427_v19  ;;  %vm426_vm5 = vcmp.eq.f32.partialorder %v425_v18, 8.507059e+37 }
 0x148   :  { %v585_v1 = vpop.eup %584  ;;  %v492_v35 = vadd.f32 %v488_v16, %v271_v5  ;;  %v277_v42 = vadd.f32 %v276_v20, %v816_v55 }
 0x149   :  { %v344_v8 = vadd.f32 %v912_v41, %v343_v45  ;;  %v417_v9 = vmul.f32 %v585_v1, %v886_v31  ;;  %v409_v12 = vsel %vm408_vm13, %v581_v29, %v405_v7  ;;  %vm422_vm1 = vweird.f32 %v585_v1 }
 0x14a   :  { %v414_v15 = vsel %vm411_vm14, %v413_v10, %v409_v12  ;;  %v268_v29 = vadd.f32 %v811_v49, %v816_v55  ;;  %vm423_vm4 = vmor %vm421_vm3, %vm422_vm1 }
 0x14b   :  { %v418_v14 = vsub.f32 1.0, %v417_v9  ;;  %v485_v21 = vmul.f32 %v476_v61, %v414_v15  ;;  %v348_v23 = vsel %vm947_vm0, %v912_v41, %v344_v8 }
 0x14c   :  { %v353_v30 = vsel %vm350_vm2, %v352_v27, %v348_v23  ;;  %v491_v39 = vadd.f32 %v487_v25, %v268_v29 }
 0x14d   :  { %v419_v24 = vmul.f32 %v585_v1, %v418_v14  ;;  %v489_v26 = vadd.f32 %v485_v21, %v457_v22  ;;  %v458_v41 = vmul.f32 %v453_v36, %v353_v30 }
 0x14e   :  { %v495_v43 = vadd.f32 %v492_v35, %v491_v39 }
 0x14f   :  { %v420_v28 = vadd.f32 %v585_v1, %v419_v24  ;;  %v493_v31 = vadd.f32 %v489_v26, %v274_v33 }
 0x151   :  { %v424_v37 = vsel %vm423_vm4, %v585_v1, %v420_v28  ;;  %v496_v46 = vadd.f32 %v495_v43, %v493_v31 }
 0x152   :  { %v429_v38 = vsel %vm426_vm5, %v428_v32, %v424_v37 }
 0x153   :  { %v486_v40 = vmul.f32 %v481_v34, %v429_v38 }
 0x155   :  { %v490_v49 = vadd.f32 %v486_v40, %v458_v41 }
 0x157   :  { %v494_v44 = vadd.f32 %v490_v49, %v277_v42 }
 0x159   :  { %v497_v47 = vadd.f32 %v496_v46, %v494_v44 }
 0x15b   :  { %498 = vst [vmem:[#allocation8] sm:$0xff] %v497_v47 }
 0x15c   :  { %509 = dma.vmem_to_hbm [thread:$0]  %s505_s29, 128, %s507_s8, [#allocation4]  }
 0x15d   :  { %686 = dma.done.wait [#allocation4], 128  }
 0x15e   :  { %687 = vsyncadd [#allocation4], 4294967168 }
 0x15f   :  { %514 = vsyncpa [#allocation3], 1 }
 0x160   :  { %515 = vsyncpa [#allocation6], 1 }
 0x161   :  { %516 = vsyncpa [#allocation4], 1 }

</bundles_post_ra>
